<compile_context>
chip_gen: v7x
topology: tpu7x:2x2x1
jax: 0.10.0
libtpu: 0.0.40
codegen_flags: <defaults>
</compile_context>

<pallas_src>
import jax
import jax.numpy as jnp
from jax.experimental import pallas as pl
from jax.experimental.pallas import tpu as pltpu

IN_DIM = 7
HIDDEN1 = 32
HIDDEN2 = 16
OUT_DIM = 1

DEFAULT_TILE_B = 32768  # lane-tile of the batch axis (multiple of 128)


def _round_up(n, m):
    return ((n + m - 1) // m) * m


def mlp_kernel(xT_ref, w1_ref, b1_ref, w2_ref, b2_ref, w3_ref, b3_ref, o_ref):
    xT = xT_ref[...]                                                   # (IN_DIM, TILE_B)
    # fc1 + ReLU                                                       # (HIDDEN1, TILE_B)
    h1 = jnp.dot(w1_ref[...], xT, preferred_element_type=jnp.float32) + b1_ref[...]
    h1 = jnp.maximum(h1, 0.0)
    # fc2 + ReLU                                                       # (HIDDEN2, TILE_B)
    h2 = jnp.dot(w2_ref[...], h1, preferred_element_type=jnp.float32) + b2_ref[...]
    h2 = jnp.maximum(h2, 0.0)
    # fc3 + Sigmoid                                                    # (OUT_DIM, TILE_B), lane-dense
    logits = jnp.dot(w3_ref[...], h2, preferred_element_type=jnp.float32) + b3_ref[...]
    o_ref[...] = jax.nn.sigmoid(logits).astype(o_ref.dtype)


def nn_forward(x, params, *, tile_b=DEFAULT_TILE_B):
    """x: (B, IN_DIM) f32.  params use PyTorch layout: W (out, in), b (out,)."""
    w1, b1, w2, b2, w3, b3 = params
    B = x.shape[0]

    # --- layout plumbing (wrapper-side, fused under jit) ----------------------
    # Batch goes to the lane axis.  Clamp the tile for small batches and pad B
    # up to a multiple of tile_b (itself a multiple of 128 -> aligned lanes).
    tile_b = min(tile_b, _round_up(B, 128))
    b_pad = _round_up(B, tile_b)
    xT = jnp.zeros((IN_DIM, b_pad), jnp.float32).at[:, :B].set(x.T)

    # Biases as (out, 1) columns -> broadcast across lanes inside the kernel.
    b1c = b1.reshape(HIDDEN1, 1).astype(jnp.float32)
    b2c = b2.reshape(HIDDEN2, 1).astype(jnp.float32)
    b3c = b3.reshape(OUT_DIM, 1).astype(jnp.float32)

    grid = (b_pad // tile_b,)

    def resident(shape):
        # Same block every grid step -> stays VMEM-resident (no re-DMA).
        return pl.BlockSpec(shape, lambda i: (0, 0))

    flops = 2 * B * (IN_DIM * HIDDEN1 + HIDDEN1 * HIDDEN2 + HIDDEN2 * OUT_DIM)
    bytes_accessed = 4 * (
        B * (IN_DIM + OUT_DIM)
        + IN_DIM * HIDDEN1 + HIDDEN1 * HIDDEN2 + HIDDEN2 * OUT_DIM
        + HIDDEN1 + HIDDEN2 + OUT_DIM
    )

    outT = pl.pallas_call(
        mlp_kernel,
        out_shape=jax.ShapeDtypeStruct((OUT_DIM, b_pad), jnp.float32),
        grid=grid,
        in_specs=[
            pl.BlockSpec((IN_DIM, tile_b), lambda i: (0, i)),  # streamed batch tiles
            resident((HIDDEN1, IN_DIM)),
            resident((HIDDEN1, 1)),
            resident((HIDDEN2, HIDDEN1)),
            resident((HIDDEN2, 1)),
            resident((OUT_DIM, HIDDEN2)),
            resident((OUT_DIM, 1)),
        ],
        out_specs=pl.BlockSpec((OUT_DIM, tile_b), lambda i: (0, i)),  # lane-dense output
        compiler_params=pltpu.CompilerParams(
            dimension_semantics=("parallel",),      # shard batch tiles across TCs on v7x
            vmem_limit_bytes=32 * 1024 * 1024,      # safe headroom on v5e/v6e/v7x
        ),
        cost_estimate=pl.CostEstimate(
            flops=flops, transcendentals=B, bytes_accessed=bytes_accessed),
    )(xT, w1, b1c, w2, b2c, w3, b3c)

    # Back to the module's (B, OUT_DIM) convention; drop batch padding.
    return outT[:, :B].T


nn_forward_jit = jax.jit(nn_forward, static_argnames=("tile_b",))


def init_params(key):
    """Deterministic init mimicking nn.Linear (PyTorch layout: W (out, in), b (out,))."""
    def linear(key, fan_in, fan_out):
        kw, kb = jax.random.split(key)
        bound = 1.0 / jnp.sqrt(fan_in)
        w = jax.random.uniform(kw, (fan_out, fan_in), jnp.float32, -bound, bound)
        b = jax.random.uniform(kb, (fan_out,), jnp.float32, -bound, bound)
        return w, b

    k1, k2, k3 = jax.random.split(key, 3)
    w1, b1 = linear(k1, IN_DIM, HIDDEN1)
    w2, b2 = linear(k2, HIDDEN1, HIDDEN2)
    w3, b3 = linear(k3, HIDDEN2, OUT_DIM)
    return (w1, b1, w2, b2, w3, b3)


def nn_reference(x, params):
    w1, b1, w2, b2, w3, b3 = params
    h1 = jnp.maximum(x @ w1.T + b1, 0.0)
    h2 = jnp.maximum(h1 @ w2.T + b2, 0.0)
    return jax.nn.sigmoid(h2 @ w3.T + b3)


if __name__ == "__main__":
    key = jax.random.PRNGKey(0)
    k_params, k_x1, k_x2 = jax.random.split(key, 3)
    params = init_params(k_params)

    # Small example consistent with the module (batch=8, features=7).
    batch = 8
    x = jax.random.normal(k_x1, (batch, IN_DIM), jnp.float32)
    out = nn_forward_jit(x, params)
    jax.block_until_ready(out)
    ref = nn_reference(x, params)
    assert out.shape == (batch, OUT_DIM)
    assert jnp.allclose(out, ref, atol=1e-5, rtol=1e-5)

    # Exercise the multi-step batch grid + padding path (tile_b forced small).
    batch2 = 300
    x2 = jax.random.normal(k_x2, (batch2, IN_DIM), jnp.float32)
    out2 = nn_forward_jit(x2, params, tile_b=128)
    jax.block_until_ready(out2)
    ref2 = nn_reference(x2, params)
    assert out2.shape == (batch2, OUT_DIM)
    assert jnp.allclose(out2, ref2, atol=1e-5, rtol=1e-5)

    print("KERNEL_OK")
</pallas_src>

<mosaic_0001>
module attributes {stable_mosaic.version = 11 : i64} {
  func.func @mlp_kernel(%arg0: i32, %arg1: memref<7x128xf32, #tpu.memory_space<vmem>>, %arg2: memref<32x7xf32, #tpu.memory_space<vmem>>, %arg3: memref<32x1xf32, #tpu.memory_space<vmem>>, %arg4: memref<16x32xf32, #tpu.memory_space<vmem>>, %arg5: memref<16x1xf32, #tpu.memory_space<vmem>>, %arg6: memref<1x16xf32, #tpu.memory_space<vmem>>, %arg7: memref<1x1xf32, #tpu.memory_space<vmem>>, %arg8: memref<1x128xf32, #tpu.memory_space<vmem>>) attributes {dimension_semantics = [#tpu.dimension_semantics<parallel>], iteration_bounds = array<i64: 1>, scalar_prefetch = 0 : i64, scratch_operands = 0 : i64, tpu.core_type = #tpu.core_type<tc>, window_params = [{transform_indices = @transform_0, window_bounds = array<i64: 7, 128>}, {pipeline_mode = #tpu.pipeline_mode<synchronous>, transform_indices = @transform_1, window_bounds = array<i64: 32, 7>}, {pipeline_mode = #tpu.pipeline_mode<synchronous>, transform_indices = @transform_2, window_bounds = array<i64: 32, 1>}, {pipeline_mode = #tpu.pipeline_mode<synchronous>, transform_indices = @transform_3, window_bounds = array<i64: 16, 32>}, {pipeline_mode = #tpu.pipeline_mode<synchronous>, transform_indices = @transform_4, window_bounds = array<i64: 16, 1>}, {pipeline_mode = #tpu.pipeline_mode<synchronous>, transform_indices = @transform_5, window_bounds = array<i64: 1, 16>}, {pipeline_mode = #tpu.pipeline_mode<synchronous>, transform_indices = @transform_6, window_bounds = array<i64: 1, 1>}, {transform_indices = @transform_7, window_bounds = array<i64: 1, 128>}]} {
    %c0 = arith.constant 0 : index
    %c0_0 = arith.constant 0 : index
    %0 = vector.load %arg1[%c0, %c0_0] : memref<7x128xf32, #tpu.memory_space<vmem>>, vector<7x128xf32>
    %c0_1 = arith.constant 0 : index
    %c0_2 = arith.constant 0 : index
    %1 = vector.load %arg2[%c0_1, %c0_2] : memref<32x7xf32, #tpu.memory_space<vmem>>, vector<32x7xf32>
    %cst = arith.constant dense<0.000000e+00> : vector<32x128xf32>
    %2 = tpu.matmul %1, %0, %cst {dimension_numbers = #tpu.dot_dimension_numbers<[1], [0], [0], [1], [0, 0, 1, 1], [], []>} : vector<32x7xf32>, vector<7x128xf32>, vector<32x128xf32> -> vector<32x128xf32>
    %c0_3 = arith.constant 0 : index
    %c0_4 = arith.constant 0 : index
    %3 = vector.load %arg3[%c0_3, %c0_4] : memref<32x1xf32, #tpu.memory_space<vmem>>, vector<32x1xf32>
    %4 = vector.broadcast %3 : vector<32x1xf32> to vector<32x128xf32>
    %5 = arith.addf %2, %4 : vector<32x128xf32>
    %cst_5 = arith.constant 0.000000e+00 : f32
    %6 = vector.broadcast %cst_5 : f32 to vector<32x128xf32>
    %7 = arith.maximumf %5, %6 : vector<32x128xf32>
    %c0_6 = arith.constant 0 : index
    %c0_7 = arith.constant 0 : index
    %8 = vector.load %arg4[%c0_6, %c0_7] : memref<16x32xf32, #tpu.memory_space<vmem>>, vector<16x32xf32>
    %cst_8 = arith.constant dense<0.000000e+00> : vector<16x128xf32>
    %9 = tpu.matmul %8, %7, %cst_8 {dimension_numbers = #tpu.dot_dimension_numbers<[1], [0], [0], [1], [0, 0, 1, 1], [], []>} : vector<16x32xf32>, vector<32x128xf32>, vector<16x128xf32> -> vector<16x128xf32>
    %c0_9 = arith.constant 0 : index
    %c0_10 = arith.constant 0 : index
    %10 = vector.load %arg5[%c0_9, %c0_10] : memref<16x1xf32, #tpu.memory_space<vmem>>, vector<16x1xf32>
    %11 = vector.broadcast %10 : vector<16x1xf32> to vector<16x128xf32>
    %12 = arith.addf %9, %11 : vector<16x128xf32>
    %cst_11 = arith.constant 0.000000e+00 : f32
    %13 = vector.broadcast %cst_11 : f32 to vector<16x128xf32>
    %14 = arith.maximumf %12, %13 : vector<16x128xf32>
    %c0_12 = arith.constant 0 : index
    %c0_13 = arith.constant 0 : index
    %15 = vector.load %arg6[%c0_12, %c0_13] : memref<1x16xf32, #tpu.memory_space<vmem>>, vector<1x16xf32>
    %cst_14 = arith.constant dense<0.000000e+00> : vector<1x128xf32>
    %16 = tpu.matmul %15, %14, %cst_14 {dimension_numbers = #tpu.dot_dimension_numbers<[1], [0], [0], [1], [0, 0, 1, 1], [], []>} : vector<1x16xf32>, vector<16x128xf32>, vector<1x128xf32> -> vector<1x128xf32>
    %c0_15 = arith.constant 0 : index
    %c0_16 = arith.constant 0 : index
    %17 = vector.load %arg7[%c0_15, %c0_16] : memref<1x1xf32, #tpu.memory_space<vmem>>, vector<1x1xf32>
    %18 = vector.broadcast %17 : vector<1x1xf32> to vector<1x128xf32>
    %19 = arith.addf %16, %18 : vector<1x128xf32>
    %20 = arith.negf %19 : vector<1x128xf32>
    %21 = math.exp %20 : vector<1x128xf32>
    %cst_17 = arith.constant 1.000000e+00 : f32
    %22 = vector.broadcast %cst_17 : f32 to vector<1x128xf32>
    %23 = arith.addf %22, %21 : vector<1x128xf32>
    %24 = arith.divf %22, %23 : vector<1x128xf32>
    %c0_18 = arith.constant 0 : index
    %c0_19 = arith.constant 0 : index
    %25 = vector.load %arg8[%c0_18, %c0_19] : memref<1x128xf32, #tpu.memory_space<vmem>>, vector<1x128xf32>
    tpu.vector_store %arg8[%c0_18, %c0_19], %24 {strides = array<i32>} : memref<1x128xf32, #tpu.memory_space<vmem>>, vector<1x128xf32>,
    return
  }
  func.func @transform_0(%arg0: i32) -> (i32, i32) {
    %c0_i32 = arith.constant 0 : i32
    %c0_i32_0 = arith.constant 0 : i32
    return %c0_i32, %arg0 : i32, i32
  }
  func.func @transform_1(%arg0: i32) -> (i32, i32) {
    %c0_i32 = arith.constant 0 : i32
    %c0_i32_0 = arith.constant 0 : i32
    %c0_i32_1 = arith.constant 0 : i32
    return %c0_i32, %c0_i32_0 : i32, i32
  }
  func.func @transform_2(%arg0: i32) -> (i32, i32) {
    %c0_i32 = arith.constant 0 : i32
    %c0_i32_0 = arith.constant 0 : i32
    %c0_i32_1 = arith.constant 0 : i32
    return %c0_i32, %c0_i32_0 : i32, i32
  }
  func.func @transform_3(%arg0: i32) -> (i32, i32) {
    %c0_i32 = arith.constant 0 : i32
    %c0_i32_0 = arith.constant 0 : i32
    %c0_i32_1 = arith.constant 0 : i32
    return %c0_i32, %c0_i32_0 : i32, i32
  }
  func.func @transform_4(%arg0: i32) -> (i32, i32) {
    %c0_i32 = arith.constant 0 : i32
    %c0_i32_0 = arith.constant 0 : i32
    %c0_i32_1 = arith.constant 0 : i32
    return %c0_i32, %c0_i32_0 : i32, i32
  }
  func.func @transform_5(%arg0: i32) -> (i32, i32) {
    %c0_i32 = arith.constant 0 : i32
    %c0_i32_0 = arith.constant 0 : i32
    %c0_i32_1 = arith.constant 0 : i32
    return %c0_i32, %c0_i32_0 : i32, i32
  }
  func.func @transform_6(%arg0: i32) -> (i32, i32) {
    %c0_i32 = arith.constant 0 : i32
    %c0_i32_0 = arith.constant 0 : i32
    %c0_i32_1 = arith.constant 0 : i32
    return %c0_i32, %c0_i32_0 : i32, i32
  }
  func.func @transform_7(%arg0: i32) -> (i32, i32) {
    %c0_i32 = arith.constant 0 : i32
    %c0_i32_0 = arith.constant 0 : i32
    return %c0_i32, %arg0 : i32, i32
  }
}

</mosaic_0001>

<bundles_post_ra>
// kernel: nn_forward.1
= control target key start
LH: loop header
LB: loop body
LE: loop exit
PB: predicated region body
PF: predicated region fallthrough
CT: control target
= control target key end

     0   :  { %vm70_vm0 = vcmask 1046528   ;;  %vm57_vm1 = vcmask 56320   ;;  %v427_v3 = vmov 0   ;;  %vm177_vm2 = vcmask 261120   ;;  %s527_s0 = inlined_call_operand.vmem [shape: f32[7,128], index: 0, kind: input, shape index: {}]   ;;  %s528_s1 = inlined_call_operand.vmem [shape: f32[32,7], index: 1, kind: input, shape index: {}]   ;;  %s529_s2 = inlined_call_operand.vmem [shape: f32[32,1], index: 2, kind: input, shape index: {}]   ;;  %s530_s6 = inlined_call_operand.<no memory space> [shape: f32[1,1], index: 6, kind: input, shape index: {}]   ;;  %s531_s4 = inlined_call_operand.vmem [shape: f32[16,1], index: 4, kind: input, shape index: {}]   ;;  %s532_s3 = inlined_call_operand.vmem [shape: f32[16,32], index: 3, kind: input, shape index: {}]   ;;  %s533_s5 = inlined_call_operand.vmem [shape: f32[1,16], index: 5, kind: input, shape index: {}]   ;;  %s534_s7 = inlined_call_operand.vmem [shape: f32[1,128], index: 7, kind: output, shape index: {}]  }
   0x1   :  { %v28_v0 = vld [vmem:[%s527_s0] sm:$0x7f]  ;;  %v30_v2 = vld [vmem:[%s528_s1 + $0x8] sm:$0xff]  ;;  %421 = vset.pattern.permute.xlu0 %v427_v3  ;;  %422 = vset.pattern.permute.xlu1 %v427_v3  ;;  %v12_v4 = vstv %s530_s6  ;;  %v31_v5 = vld [vmem:[%s528_s1 + $0x10] sm:$0xff]  ;;  %v428_v34 = vmov 0.0|0.0   ;;  %vm429_vm3 = vmmov 0   ;;  %v268_v46 = vlaneseq }
   0x2   :  { %v29_v1 = vld [vmem:[%s528_s1] sm:$0xff]  ;;  %380 = vmatprep.subr.msk.mxu0 %vm70_vm0, %v28_v0  ;;  %13 = vst [vmem:[#allocation2] sm:$0x1] %v12_v4  ;;  %v35_v7 = vld [vmem:[%s529_s2 + $0x10] sm:$0xff]  ;;  %v34_v8 = vld [vmem:[%s529_s2 + $0x8] sm:$0xff]  ;;  %v430_v35 = vmov 0.0  }
   0x3   :  { %382 = vmatprep.mubr.msk.f32.mxu0 %vm57_vm1, %v29_v1  ;;  %v33_v6 = vld [vmem:[%s529_s2] sm:$0xff]  ;;  %381 = vmatpush3.msk.msra.mxu0 %vm70_vm0, %v28_v0  ;;  %v32_v9 = vld [vmem:[%s528_s1 + $0x18] sm:$0xff]  ;;  %v166_v12 = vld [vmem:[%s531_s4 + $0x8] sm:$0xff]  ;;  %vm272_vm4 = vcmask 130048   ;;  %v269_v47 = vshrl.u32 %v268_v46, 7 }
   0x4   :  { %39 = vperm.xlu0 %421, %v33_v6   ;;  %383 = vmatmul.mubr.msk.f32.vlgmr.msra.gmra.mrb[0].mxu0 %vm57_vm1, %v30_v2  ;;  %v36_v10 = vld [vmem:[%s529_s2 + $0x18] sm:$0xff]  ;;  %v165_v11 = vld [vmem:[%s531_s4] sm:$0xff]  ;;  %v164_v33 = vld [vmem:[%s532_s3 + $0x8] sm:$0xff] }
   0x5   :  { %49 = vperm.xlu1 %422, %v35_v7   ;;  %385 = vmatprep.mubr.msk.f32.mxu0 %vm57_vm1, %v31_v5  ;;  %v163_v14 = vld [vmem:[%s532_s3] sm:$0xff]  ;;  %v270_v48 = vsub.s32 0, %v269_v47 }
   0x6   :  { %396 = vmatprep.mubr.msk.f32.mxu1 %vm177_vm2, %v163_v14  ;;  %414 = vmatprep.subr.bf16.mxu0 %v428_v34  ;;  %v261_v45 = vld [vmem:[%s533_s5] sm:$0x1] }
   0x8   :  { %44 = vperm.xlu0 %421, %v34_v8   ;;  %386 = vmatmul.mubr.msk.f32.gmra.mrb[2].mxu0 %vm57_vm1, %v32_v9 }
   0x9   :  { %54 = vperm.xlu1 %422, %v36_v10   ;;  %v262_v13 = vld [vmem:[#allocation2] sm:$0x1]  ;;  %403 = vmatprep.mubr.msk.f32.mxu0 %vm429_vm3, %v430_v35 }
   0xc   :  { %169 = vperm.xlu0 %421, %v165_v11  }
   0xd   :  { %174 = vperm.xlu1 %422, %v166_v12  }
  0x10   :  { %265 = vperm.xlu0 %421, %v262_v13  }
  0x83   :  { %v40_v15 = vpop.permute.xlu0 %39 }
  0x84   :  { %v50_v16 = vpop.permute.xlu1 %49 }
  0x87   :  { %v45_v17 = vpop.permute.xlu0 %44 }
  0x88   :  { %v55_v23 = vpop.permute.xlu1 %54 }
  0x8b   :  { %v170_v38 = vpop.permute.xlu0 %169 }
  0x8c   :  { %v175_v36 = vpop.permute.xlu1 %174 }
  0x8f   :  { %v266_v49 = vpop.permute.xlu0 %265 }
  0x90   :  { %v271_v50 = vrot.slane %v266_v49, %v270_v48 }
  0xd7   :  { %v384_v18 = vpop.f32.mrb[0].mxu0 }
  0xd8   :  { %v146_v19 = vadd.f32 %v384_v18, %v45_v17  ;;  %v140_v20 = vpop.f32.mrb[1].mxu0 }
  0xd9   :  { %v141_v21 = vadd.f32 %v140_v20, %v40_v15 }
  0xda   :  { %v160_v22 = vmax.f32 %v146_v19, 0.0 }
  0xdb   :  { %v159_v24 = vmax.f32 %v141_v21, 0.0  ;;  %v387_v25 = vpop.f32.mrb[2].mxu0 }
  0xdc   :  { %v156_v26 = vadd.f32 %v387_v25, %v55_v23  ;;  %v150_v27 = vpop.f32.mrb[3].mxu0 }
  0xdd   :  { %v151_v28 = vadd.f32 %v150_v27, %v50_v16  ;;  %v406_v29 = vpack.c.bf16 %v160_v22, %v159_v24 }
  0xde   :  { %v162_v30 = vmax.f32 %v156_v26, 0.0 }
  0xdf   :  { %v161_v31 = vmax.f32 %v151_v28, 0.0  ;;  %407 = vmatprep.subr.bf16.mxu1 %v406_v29 }
  0xe0   :  { %409 = vmatpush3.bf16.msra.mxu1 %v406_v29 }
  0xe1   :  { %v410_v32 = vpack.c.bf16 %v162_v30, %v161_v31 }
  0xe3   :  { %411 = vmatprep.subr.bf16.mxu1 %v410_v32 }
  0xe4   :  { %413 = vmatpush3.bf16.msra.mxu1 %v410_v32 }
  0xe7   :  { %397 = vmatmul.mubr.msk.f32.vlgmr.msra.gmra.mrb[0].mxu1 %vm177_vm2, %v164_v33 }
 0x1ba   :  { %v398_v37 = vpop.f32.mrb[0].mxu1 }
 0x1bb   :  { %v256_v39 = vadd.f32 %v398_v37, %v175_v36  ;;  %v250_v40 = vpop.f32.mrb[1].mxu1 }
 0x1bc   :  { %v251_v41 = vadd.f32 %v250_v40, %v170_v38 }
 0x1bd   :  { %v260_v42 = vmax.f32 %v256_v39, 0.0 }
 0x1be   :  { %v259_v43 = vmax.f32 %v251_v41, 0.0 }
 0x1c0   :  { %v415_v44 = vpack.c.bf16 %v260_v42, %v259_v43 }
 0x1c2   :  { %416 = vmatpush3.bf16.msra.mxu0 %v415_v44 }
 0x1c5   :  { %404 = vmatmul.mubr.msk.f32.vlgmr.msra.gmra.mrb[4].mxu0 %vm272_vm4, %v261_v45 }
 0x298   :  { %v342_v51 = vpop.f32.mrb[4].mxu0 }
 0x299   :  { %v343_v52 = vadd.f32 %v342_v51, %v271_v50  ;;  %v405_v53 = vpop.f32.mrb[5].mxu0 }
 0x29b   :  { %v365_v54 = vmul.f32 -1.442695, %v343_v52 }
 0x29d   :  { %423 = vpow2.f32 %v365_v54 }
 0x2a7   :  { %v424_v55 = vpop.eup %423 }
 0x2a8   :  { %v349_v56 = vadd.f32 1.0, %v424_v55 }
 0x2aa   :  { %425 = vrcp.f32 %v349_v56 }
 0x2b4   :  { %v426_v57 = vpop.eup %425 }
 0x2b5   :  { %352 = vst [vmem:[%s534_s7] sm:$0x1] %v426_v57 }

</bundles_post_ra>
